<compile_context>
chip_gen: v7x
topology: tpu7x:2x2x1
jax: 0.10.0
libtpu: 0.0.40
codegen_flags: <defaults>
</compile_context>

<pallas_src>
import jax
import jax.numpy as jnp
from jax.experimental import pallas as pl
from jax.experimental.pallas import tpu as pltpu


def gap_conv1x1_kernel(x_ref, w_ref, b_ref, o_ref, acc_ref):
    # x_ref  : (1, TC, HW)  channel-tile of one batch element
    # w_ref  : (CO, TC)     1x1-conv weight tile, pre-scaled by 1/(H*W)
    # b_ref  : (CO, 1)      bias column
    # o_ref  : (1, CO, 1)   output column for this batch element
    # acc_ref: (CO, 1)      f32 accumulator, persists across the C grid axis
    c = pl.program_id(1)

    @pl.when(c == 0)
    def _():
        acc_ref[...] = jnp.zeros_like(acc_ref)

    x = x_ref[0]                                    # (TC, HW)
    hw = x.shape[1]
    # Spatial sum on the MXU (keeps VPU/XLU free): (TC, HW) @ (HW, 1) -> (TC, 1)
    ones = jnp.ones((hw, 1), dtype=x.dtype)
    pooled = jnp.dot(x, ones, preferred_element_type=jnp.float32)
    # Partial 1x1 conv, row-major MXU matmul: (CO, TC) @ (TC, 1) -> (CO, 1)
    acc_ref[...] += jnp.dot(w_ref[...], pooled, preferred_element_type=jnp.float32)

    @pl.when(c == pl.num_programs(1) - 1)
    def _():
        o_ref[...] = ((acc_ref[...] + b_ref[...]).astype(o_ref.dtype))[None]


def gap_conv1x1(x_nchw, weight, bias):
    """Global average pool over (H, W) followed by a 1x1 conv (PyTorch NCHW).

    x_nchw: (N, C, H, W) activations (f32 or bf16)
    weight: (CO, C) or (CO, C, 1, 1) conv weight
    bias:   (CO,) conv bias
    returns (N, CO, 1, 1) float32, matching the PyTorch module.
    """
    N, C, H, W = x_nchw.shape
    CO = bias.shape[0]
    HW = H * W

    # Channel tile: pipelines the reduction; 128 keeps the weight tile's lane
    # dim (8,128)-aligned. Fall back to a single tile if C is not divisible.
    TC = 128 if C % 128 == 0 else C
    num_c = C // TC

    x2 = x_nchw.reshape(N, C, HW)                              # keep input dtype
    # Fold the 1/(H*W) mean scale into the static weight; keep PyTorch (CO, C).
    w_scaled = weight.reshape(CO, C).astype(jnp.float32) / jnp.float32(HW)
    b_col = bias.reshape(CO, 1).astype(jnp.float32)

    out = pl.pallas_call(
        gap_conv1x1_kernel,
        out_shape=jax.ShapeDtypeStruct((N, CO, 1), jnp.float32),
        grid=(N, num_c),
        in_specs=[
            pl.BlockSpec((1, TC, HW), lambda n, c: (n, c, 0)),
            pl.BlockSpec((CO, TC), lambda n, c: (0, c)),
            pl.BlockSpec((CO, 1), lambda n, c: (0, 0)),
        ],
        out_specs=pl.BlockSpec((1, CO, 1), lambda n, c: (n, 0, 0)),
        scratch_shapes=[pltpu.VMEM((CO, 1), jnp.float32)],
        compiler_params=pltpu.CompilerParams(
            dimension_semantics=("parallel", "arbitrary")),
    )(x2, w_scaled, b_col)

    # match PyTorch output shape (N, CO, 1, 1)
    return out.reshape(N, CO, 1, 1)


if __name__ == "__main__":
    # Shapes implied by the module: x135 is (1, 384, 28, 28), conv is 384 -> 16.
    N, C, H, W = 1, 384, 28, 28
    CO = 16

    key = jax.random.PRNGKey(0)
    kx, kw, kb = jax.random.split(key, 3)
    x = jax.random.normal(kx, (N, C, H, W), dtype=jnp.float32)
    # deterministic synthetic parameters (PyTorch-like scale for a 1x1 conv)
    fan_in = C
    bound = 1.0 / (fan_in ** 0.5)
    weight = jax.random.uniform(kw, (CO, C, 1, 1), jnp.float32, -bound, bound)
    bias = jax.random.uniform(kb, (CO,), jnp.float32, -bound, bound)

    y = gap_conv1x1(x, weight, bias)
    y = jax.block_until_ready(y)

    # plain-JAX reference for a sanity check
    ref = jnp.einsum("oc,nc->no", weight.reshape(CO, C), x.mean(axis=(2, 3)))
    ref = (ref + bias[None, :]).reshape(N, CO, 1, 1)
    assert y.shape == (N, CO, 1, 1)
    assert jnp.allclose(y, ref, atol=1e-4, rtol=1e-4)

    print("KERNEL_OK")
</pallas_src>

<mosaic_0001>
module attributes {stable_mosaic.version = 11 : i64} {
  func.func @gap_conv1x1_kernel(%arg0: i32, %arg1: i32, %arg2: memref<1x128x784xf32, #tpu.memory_space<vmem>>, %arg3: memref<16x128xf32, #tpu.memory_space<vmem>>, %arg4: memref<16x1xf32, #tpu.memory_space<vmem>>, %arg5: memref<1x16x1xf32, #tpu.memory_space<vmem>>, %arg6: memref<16x1xf32, #tpu.memory_space<vmem>>) attributes {dimension_semantics = [#tpu.dimension_semantics<parallel>, #tpu.dimension_semantics<arbitrary>], iteration_bounds = array<i64: 1, 3>, scalar_prefetch = 0 : i64, scratch_operands = 1 : i64, tpu.core_type = #tpu.core_type<tc>, window_params = [{transform_indices = @transform_0, window_bounds = array<i64: 1, 128, 784>}, {transform_indices = @transform_1, window_bounds = array<i64: 16, 128>}, {pipeline_mode = #tpu.pipeline_mode<synchronous>, transform_indices = @transform_2, window_bounds = array<i64: 16, 1>}, {transform_indices = @transform_3, window_bounds = array<i64: 1, 16, 1>}]} {
    %c0_i32 = arith.constant 0 : i32
    %0 = arith.cmpi eq, %arg1, %c0_i32 : i32
    %1 = arith.extui %0 : i1 to i32
    %c0_i32_0 = arith.constant 0 : i32
    %2 = arith.cmpi ne, %1, %c0_i32_0 : i32
    scf.if %2 {
      %cst_12 = arith.constant 0.000000e+00 : f32
      %15 = vector.broadcast %cst_12 : f32 to vector<16x1xf32>
      %c0_13 = arith.constant 0 : index
      %c0_14 = arith.constant 0 : index
      %16 = vector.load %arg6[%c0_13, %c0_14] : memref<16x1xf32, #tpu.memory_space<vmem>>, vector<16x1xf32>
      tpu.vector_store %arg6[%c0_13, %c0_14], %15 {strides = array<i32>} : memref<16x1xf32, #tpu.memory_space<vmem>>, vector<16x1xf32>,
    } else {
    }
    %c0 = arith.constant 0 : index
    %c0_1 = arith.constant 0 : index
    %c0_2 = arith.constant 0 : index
    %3 = vector.load %arg2[%c0, %c0_1, %c0_2] : memref<1x128x784xf32, #tpu.memory_space<vmem>>, vector<1x128x784xf32>
    %4 = vector.shape_cast %3 : vector<1x128x784xf32> to vector<128x784xf32>
    %cst = arith.constant 1.000000e+00 : f32
    %5 = vector.broadcast %cst : f32 to vector<784x1xf32>
    %cst_3 = arith.constant dense<0.000000e+00> : vector<128x1xf32>
    %6 = tpu.matmul %4, %5, %cst_3 {dimension_numbers = #tpu.dot_dimension_numbers<[1], [0], [0], [1], [0, 0, 1, 1], [], []>} : vector<128x784xf32>, vector<784x1xf32>, vector<128x1xf32> -> vector<128x1xf32>
    %c0_4 = arith.constant 0 : index
    %c0_5 = arith.constant 0 : index
    %7 = vector.load %arg6[%c0_4, %c0_5] : memref<16x1xf32, #tpu.memory_space<vmem>>, vector<16x1xf32>
    %c0_6 = arith.constant 0 : index
    %c0_7 = arith.constant 0 : index
    %8 = vector.load %arg3[%c0_6, %c0_7] : memref<16x128xf32, #tpu.memory_space<vmem>>, vector<16x128xf32>
    %cst_8 = arith.constant dense<0.000000e+00> : vector<16x1xf32>
    %9 = tpu.matmul %8, %6, %cst_8 {dimension_numbers = #tpu.dot_dimension_numbers<[1], [0], [0], [1], [0, 0, 1, 1], [], []>} : vector<16x128xf32>, vector<128x1xf32>, vector<16x1xf32> -> vector<16x1xf32>
    %10 = arith.addf %7, %9 : vector<16x1xf32>
    %c0_9 = arith.constant 0 : index
    %c0_10 = arith.constant 0 : index
    %11 = vector.load %arg6[%c0_9, %c0_10] : memref<16x1xf32, #tpu.memory_space<vmem>>, vector<16x1xf32>
    tpu.vector_store %arg6[%c0_9, %c0_10], %10 {strides = array<i32>} : memref<16x1xf32, #tpu.memory_space<vmem>>, vector<16x1xf32>,
    %c2_i32 = arith.constant 2 : i32
    %12 = arith.cmpi eq, %arg1, %c2_i32 : i32
    %13 = arith.extui %12 : i1 to i32
    %c0_i32_11 = arith.constant 0 : i32
    %14 = arith.cmpi ne, %13, %c0_i32_11 : i32
    scf.if %14 {
      %c0_12 = arith.constant 0 : index
      %c0_13 = arith.constant 0 : index
      %15 = vector.load %arg6[%c0_12, %c0_13] : memref<16x1xf32, #tpu.memory_space<vmem>>, vector<16x1xf32>
      %c0_14 = arith.constant 0 : index
      %c0_15 = arith.constant 0 : index
      %16 = vector.load %arg4[%c0_14, %c0_15] : memref<16x1xf32, #tpu.memory_space<vmem>>, vector<16x1xf32>
      %17 = arith.addf %15, %16 : vector<16x1xf32>
      %18 = vector.shape_cast %17 : vector<16x1xf32> to vector<1x16x1xf32>
      %c0_16 = arith.constant 0 : index
      %c0_17 = arith.constant 0 : index
      %c0_18 = arith.constant 0 : index
      %19 = vector.load %arg5[%c0_16, %c0_17, %c0_18] : memref<1x16x1xf32, #tpu.memory_space<vmem>>, vector<1x16x1xf32>
      tpu.vector_store %arg5[%c0_16, %c0_17, %c0_18], %18 {strides = array<i32>} : memref<1x16x1xf32, #tpu.memory_space<vmem>>, vector<1x16x1xf32>,
    } else {
    }
    return
  }
  func.func @transform_0(%arg0: i32, %arg1: i32) -> (i32, i32, i32) {
    %c0_i32 = arith.constant 0 : i32
    %c0_i32_0 = arith.constant 0 : i32
    return %arg0, %arg1, %c0_i32 : i32, i32, i32
  }
  func.func @transform_1(%arg0: i32, %arg1: i32) -> (i32, i32) {
    %c0_i32 = arith.constant 0 : i32
    %c0_i32_0 = arith.constant 0 : i32
    return %c0_i32, %arg1 : i32, i32
  }
  func.func @transform_2(%arg0: i32, %arg1: i32) -> (i32, i32) {
    %c0_i32 = arith.constant 0 : i32
    %c0_i32_0 = arith.constant 0 : i32
    %c0_i32_1 = arith.constant 0 : i32
    return %c0_i32, %c0_i32_0 : i32, i32
  }
  func.func @transform_3(%arg0: i32, %arg1: i32) -> (i32, i32, i32) {
    %c0_i32 = arith.constant 0 : i32
    %c0_i32_0 = arith.constant 0 : i32
    %c0_i32_1 = arith.constant 0 : i32
    return %arg0, %c0_i32, %c0_i32_0 : i32, i32, i32
  }
}

</mosaic_0001>

<bundles_post_ra>
// kernel: tpu_custom_call.1
= control target key start
LH: loop header
LB: loop body
LE: loop exit
PB: predicated region body
PF: predicated region fallthrough
CT: control target
= control target key end

     0   :  { %s1764_s12 = smov 0   ;;  %s1766_s13 = smov 0   ;;  %s2094_s0 = inlined_call_operand.vmem [shape: f32[1,384,784], index: 0, kind: input, shape index: {}]   ;;  %s2095_s1 = inlined_call_operand.vmem [shape: f32[16,384], index: 1, kind: input, shape index: {}]   ;;  %s2096_s2 = inlined_call_operand.vmem [shape: f32[16,1], index: 2, kind: input, shape index: {}]   ;;  %s2097_s3 = inlined_call_operand.vmem [shape: f32[1,16,1], index: 3, kind: output, shape index: {}]  }
   0x1   :  { %s1768_s14 = smov 0   ;;  %s1770_s15 = smov 0  }
   0x2   :  { %s1772_s16 = smov 0  }
   0x3 LB: > { %s22_s17 = sadd.s32 1, %s1736_s15  ;;  %p67_p1 = scmp.ne.s32.totalorder %s1728_s13, %s1724_s12  ;;  %s1740_s16 = sphi %s1772_s16, %s13_s16   ;;  %s1736_s15 = sphi %s1770_s15, %s2101_s15   ;;  %s1732_s14 = sphi %s1768_s14, %s2100_s14   ;;  %s1728_s13 = sphi %s1766_s13, %s2099_s13   ;;  %s1724_s12 = sphi %s1764_s12, %s2098_s12  }
   0x4   : > { %p23_p0 = scmp.ge.s32.totalorder %s22_s17, 3  ;;  %p68_p2 = scmp.eq.s32.totalorder %s1740_s16, 0 }
   0x5   : > { %s60_s19 = sadd.s32 1, %s1728_s13  ;;  %p1194_p5 = scmp.ge.s32.totalorder %s1740_s16, 3 }
   0x6   : > { %s2103_s17 = smov (%p23_p0, %s22_s17), 0  ;;  %p69_p3 = por %p68_p2, %p67_p1 }
   0x7   : > { %s57_s18 = ssub.s32 %s1736_s15, %s2103_s17  ;;  %143 = sbr.rel (%p1194_p5) target bundleno = 21 (0x15), region = 20 }
   0x8   : > { %p58_p4 = scmp.eq.s32.totalorder %s57_s18, 0 }
   0xa   : > { %s1799_s20 = scalar_select %p58_p4, %s1728_s13, %s60_s19  }
   0xe   : > { %160 = sbr.rel (!%p69_p3) target bundleno = 21 (0x15), region = 28  ;;  %s162_s21 = sand.u32 (%p69_p3), 1, %s1728_s13  }
   0xf   : > { %s1196_s22 = sshll.u32 (%p69_p3), %s1736_s15, 3  ;;  %s1195_s23 = sshll.u32 (%p69_p3), %s162_s21, 4 }
  0x10   : > { %s166_s26 = scalar_lea.vmem (%p69_p3), %s2095_s1, %s1196_s22  ;;  %s164_s27 = scalar_lea.vmem (%p69_p3), [#allocation3], %s1195_s23 }
  0x11   : > { %v196_v0 = vld [vmem:[%s166_s26] sm:$0xff] (%p69_p3)  ;;  %v198_v1 = vld [vmem:[%s166_s26 + $0x18] sm:$0xff] (%p69_p3) }
  0x12   : > { %197 = vst [vmem:[%s164_s27] sm:$0xff] (%p69_p3), %v196_v0  ;;  %199 = vst [vmem:[%s164_s27 + $0x8] sm:$0xff] (%p69_p3), %v198_v1 }
  0x15 PF: > { %p1197_p6 = scmp.ge.s32.totalorder %s1740_s16, 1  ;;  %p204_p7 = scmp.lt.s32.totalorder %s1740_s16, 4 }
  0x17   : > { %p205_p8 = pnand %p1197_p6, %p204_p7 }
  0x18   : > { %s211_s28 = sand.u32 (!%p205_p8), 1, %s1724_s12   ;;  %s1199_s29 = sshll.u32 (!%p205_p8), %s1732_s14, 4 }
  0x19   : > { %208 = sbr.rel (%p205_p8) target bundleno = 639 (0x27f), region = 66  ;;  %s1811_s30 = sshll.u32 (!%p205_p8), %s211_s28, 4 }
  0x1a   : > { %p247_p9 = scmp.lt.s32.totalorder (!%p205_p8), %s1199_s29, 47  ;;  %s213_s8 = scalar_lea.vmem (!%p205_p8), [#allocation3], %s1811_s30 }
  0x1b   : > { %p1201_p10 = scmp.ne.s32.totalorder (!%p205_p8), %s1732_s14, 0 }
  0x20   : > { %s2105_s29 = smov (!%p247_p9, %s1199_s29), 47  ;;  %263 = sbr.rel (%p1201_p10) target bundleno = 39 (0x27), region = 74 }
  0x21   : > { %s1659_s4 = smul.u32 56, %s2105_s29  ;;  %vm264_vm0 = vcmask (!%p1201_p10), 7168   ;;  %v1742_v2 = vmov (!%p1201_p10), 0.0  }
  0x22   : > { %265 = vst.msk [vmem:[#allocation2] sm:$0xff] (!%p1201_p10), %vm264_vm0, %v1742_v2  ;;  %266 = vst.msk [vmem:[#allocation2 + $0x8] sm:$0xff] (!%p1201_p10), %vm264_vm0, %v1742_v2 }
  0x23   : > { %s1816_s7 = scalar_lea.vmem %s2094_s0, %s1659_s4 }
  0x27 PF: > { %v1743_v3 = vmov 1.0|1.0   ;;  %v268_v4 = vld [vmem:[%s1816_s7 + $0x8] sm:$0xff]  ;;  %v270_v5 = vld [vmem:[%s1816_s7 + $0x18] sm:$0xff]  ;;  %v267_v6 = vld [vmem:[%s1816_s7] sm:$0xff]  ;;  %vm379_vm1 = vcmask 130048  }
  0x28   : > { %1561 = vmatprep.subr.bf16.mxu0 %v1743_v3  ;;  %1577 = vmatprep.subr.bf16.mxu1 %v1743_v3  ;;  %v269_v7 = vld [vmem:[%s1816_s7 + $0x10] sm:$0xff]  ;;  %v275_v8 = vld [vmem:[%s1816_s7 + $0x40] sm:$0xff]  ;;  %v274_v10 = vld [vmem:[%s1816_s7 + $0x38] sm:$0xff]  ;;  %vm1089_vm2 = vcmask 7168   ;;  %p1218_p11 = scmp.ne.s32.totalorder %s1732_s14, 2 }
  0x29   : > { %1562 = vmatpush3.bf16.msra.mxu0 %v1743_v3  ;;  %1578 = vmatpush3.bf16.msra.mxu1 %v1743_v3  ;;  %v277_v9 = vld [vmem:[%s1816_s7 + $0x50] sm:$0xff]  ;;  %v276_v11 = vld [vmem:[%s1816_s7 + $0x48] sm:$0xff]  ;;  %v282_v12 = vld [vmem:[%s1816_s7 + $0x78] sm:$0xff] }
  0x2a   : > { %1563 = vmatprep.subr.bf16.mxu0 %v1743_v3  ;;  %1579 = vmatprep.subr.bf16.mxu1 %v1743_v3  ;;  %v284_v13 = vld [vmem:[%s1816_s7 + $0x88] sm:$0xff]  ;;  %v281_v14 = vld [vmem:[%s1816_s7 + $0x70] sm:$0xff]  ;;  %v283_v15 = vld [vmem:[%s1816_s7 + $0x80] sm:$0xff] }
  0x2b   : > { %492 = vmatprep.mubr.f32.mxu0 %v268_v4  ;;  %637 = vmatprep.mubr.f32.mxu1 %v270_v5  ;;  %v289_v16 = vld [vmem:[%s1816_s7 + $0xb0] sm:$0xff]  ;;  %v291_v17 = vld [vmem:[%s1816_s7 + $0xc0] sm:$0xff]  ;;  %v288_v18 = vld [vmem:[%s1816_s7 + $0xa8] sm:$0xff] }
  0x2c   : > { %v290_v19 = vld [vmem:[%s1816_s7 + $0xb8] sm:$0xff]  ;;  %v296_v20 = vld [vmem:[%s1816_s7 + $0xe8] sm:$0xff]  ;;  %v295_v22 = vld [vmem:[%s1816_s7 + $0xe0] sm:$0xff] }
  0x2d   : > { %1564 = vmatpush3.bf16.msra.mxu0 %v1743_v3  ;;  %1580 = vmatpush3.bf16.msra.mxu1 %v1743_v3  ;;  %v298_v21 = vld [vmem:[%s1816_s7 + $0xf8] sm:$0xff]  ;;  %v297_v23 = vld [vmem:[%s1816_s7 + $0xf0] sm:$0xff]  ;;  %v303_v24 = vld [vmem:[%s1816_s7 + $0x120] sm:$0xff] }
  0x2e   : > { %1565 = vmatprep.subr.bf16.mxu0 %v1743_v3  ;;  %1581 = vmatprep.subr.bf16.mxu1 %v1743_v3  ;;  %v305_v25 = vld [vmem:[%s1816_s7 + $0x130] sm:$0xff]  ;;  %v302_v26 = vld [vmem:[%s1816_s7 + $0x118] sm:$0xff]  ;;  %v304_v27 = vld [vmem:[%s1816_s7 + $0x128] sm:$0xff] }
  0x2f   : > { %v310_v28 = vld [vmem:[%s1816_s7 + $0x158] sm:$0xff]  ;;  %v312_v29 = vld [vmem:[%s1816_s7 + $0x168] sm:$0xff]  ;;  %v309_v30 = vld [vmem:[%s1816_s7 + $0x150] sm:$0xff] }
  0x30   : > { %v311_v31 = vld [vmem:[%s1816_s7 + $0x160] sm:$0xff]  ;;  %v317_v32 = vld [vmem:[%s1816_s7 + $0x190] sm:$0xff]  ;;  %v316_v34 = vld [vmem:[%s1816_s7 + $0x188] sm:$0xff] }
  0x31   : > { %1566 = vmatpush3.bf16.msra.mxu0 %v1743_v3  ;;  %1582 = vmatpush3.bf16.msra.mxu1 %v1743_v3  ;;  %v319_v33 = vld [vmem:[%s1816_s7 + $0x1a0] sm:$0xff]  ;;  %v318_v35 = vld [vmem:[%s1816_s7 + $0x198] sm:$0xff]  ;;  %v324_v36 = vld [vmem:[%s1816_s7 + $0x1c8] sm:$0xff] }
  0x32   : > { %1567 = vmatprep.subr.bf16.mxu0 %v1743_v3  ;;  %1583 = vmatprep.subr.bf16.mxu1 %v1743_v3  ;;  %v326_v37 = vld [vmem:[%s1816_s7 + $0x1d8] sm:$0xff]  ;;  %v323_v38 = vld [vmem:[%s1816_s7 + $0x1c0] sm:$0xff]  ;;  %v325_v39 = vld [vmem:[%s1816_s7 + $0x1d0] sm:$0xff] }
  0x33   : > { %v331_v40 = vld [vmem:[%s1816_s7 + $0x200] sm:$0xff]  ;;  %v333_v41 = vld [vmem:[%s1816_s7 + $0x210] sm:$0xff]  ;;  %v330_v42 = vld [vmem:[%s1816_s7 + $0x1f8] sm:$0xff] }
  0x34   : > { %v332_v43 = vld [vmem:[%s1816_s7 + $0x208] sm:$0xff]  ;;  %v338_v44 = vld [vmem:[%s1816_s7 + $0x238] sm:$0xff]  ;;  %v337_v46 = vld [vmem:[%s1816_s7 + $0x230] sm:$0xff] }
  0x35   : > { %1568 = vmatpush3.bf16.msra.mxu0 %v1743_v3  ;;  %1584 = vmatpush3.bf16.msra.mxu1 %v1743_v3  ;;  %v340_v45 = vld [vmem:[%s1816_s7 + $0x248] sm:$0xff]  ;;  %v339_v47 = vld [vmem:[%s1816_s7 + $0x240] sm:$0xff]  ;;  %v345_v48 = vld [vmem:[%s1816_s7 + $0x270] sm:$0xff] }
  0x36   : > { %1569 = vmatprep.subr.bf16.mxu0 %v1743_v3  ;;  %1585 = vmatprep.subr.bf16.mxu1 %v1743_v3  ;;  %v347_v49 = vld [vmem:[%s1816_s7 + $0x280] sm:$0xff]  ;;  %v344_v50 = vld [vmem:[%s1816_s7 + $0x268] sm:$0xff]  ;;  %v346_v51 = vld [vmem:[%s1816_s7 + $0x278] sm:$0xff] }
  0x37   : > { %v352_v52 = vld [vmem:[%s1816_s7 + $0x2a8] sm:$0xff]  ;;  %v354_v53 = vld [vmem:[%s1816_s7 + $0x2b8] sm:$0xff]  ;;  %v351_v54 = vld [vmem:[%s1816_s7 + $0x2a0] sm:$0xff] }
  0x38   : > { %v353_v55 = vld [vmem:[%s1816_s7 + $0x2b0] sm:$0xff]  ;;  %v359_v56 = vld [vmem:[%s1816_s7 + $0x2e0] sm:$0xff]  ;;  %v358_v58 = vld [vmem:[%s1816_s7 + $0x2d8] sm:$0xff] }
  0x39   : > { %1570 = vmatpush3.bf16.msra.mxu0 %v1743_v3  ;;  %1586 = vmatpush3.bf16.msra.mxu1 %v1743_v3  ;;  %v361_v57 = vld [vmem:[%s1816_s7 + $0x2f0] sm:$0xff]  ;;  %v360_v59 = vld [vmem:[%s1816_s7 + $0x2e8] sm:$0xff]  ;;  %v366_v60 = vld [vmem:[%s1816_s7 + $0x318] sm:$0xff] }
  0x3a   : > { %1571 = vmatprep.subr.bf16.mxu0 %v1743_v3  ;;  %1587 = vmatprep.subr.bf16.mxu1 %v1743_v3  ;;  %v368_v61 = vld [vmem:[%s1816_s7 + $0x328] sm:$0xff]  ;;  %v365_v62 = vld [vmem:[%s1816_s7 + $0x310] sm:$0xff]  ;;  %v367_v63 = vld [vmem:[%s1816_s7 + $0x320] sm:$0xff] }
  0x3b   : > { %v373_v0 = vld [vmem:[%s1816_s7 + $0x350] sm:$0xff]  ;;  %v375_v1 = vld [vmem:[%s1816_s7 + $0x360] sm:$0xff]  ;;  %v372_v2 = vld [vmem:[%s1816_s7 + $0x348] sm:$0xff] }
  0x3c   : > { %v374_v4 = vld [vmem:[%s1816_s7 + $0x358] sm:$0xff]  ;;  %v272_v5 = vld [vmem:[%s1816_s7 + $0x28] sm:$0xff] }
  0x3d   : > { %1572 = vmatpush3.bf16.msra.mxu0 %v1743_v3  ;;  %1588 = vmatpush3.bf16.msra.mxu1 %v1743_v3 }
  0x3e   : > { %1573 = vmatprep.subr.bf16.mxu0 %v1743_v3  ;;  %1589 = vmatprep.subr.bf16.mxu1 %v1743_v3 }
  0x41   : > { %1574 = vmatpush3.bf16.msra.mxu0 %v1743_v3  ;;  %1590 = vmatpush3.bf16.msra.mxu1 %v1743_v3 }
  0x42   : > { %1575 = vmatprep.subr.bf16.mxu0 %v1743_v3  ;;  %1591 = vmatprep.subr.bf16.mxu1 %v1743_v3 }
  0x45   : > { %1576 = vmatpush3.bf16.msra.mxu0 %v1743_v3  ;;  %1592 = vmatpush3.bf16.msra.mxu1 %v1743_v3 }
  0x46   : > { %1593 = vmatprep.subr.bf16.mxu0 %v1743_v3  ;;  %1643 = vmatprep.subr.bf16.mxu1 %v1743_v3 }
  0x48   : > { %493 = vmatmul.mubr.f32.vlgmr.msra.gmra.mrb[0].mxu0 %v267_v6  ;;  %638 = vmatmul.mubr.f32.vlgmr.msra.gmra.mrb[0].mxu1 %v269_v7  ;;  %v363_v6 = vld [vmem:[%s1816_s7 + $0x300] sm:$0xff] }
  0x49   : > { %1594 = vmatpush3.bf16.msra.mxu0 %v1743_v3  ;;  %497 = vmatprep.mubr.f32.mxu0 %v275_v8  ;;  %v271_v7 = vld [vmem:[%s1816_s7 + $0x20] sm:$0xff]  ;;  %v362_v8 = vld [vmem:[%s1816_s7 + $0x2f8] sm:$0xff] }
  0x4a   : > { %642 = vmatprep.mubr.f32.mxu1 %v277_v9  ;;  %1595 = vmatprep.subr.bf16.mxu0 %v1743_v3  ;;  %v279_v9 = vld [vmem:[%s1816_s7 + $0x60] sm:$0xff] }
  0x4b   : > { %1651 = vmatpush3.bf16.msra.mxu1 %v1743_v3 }
  0x4c   : > { %498 = vmatmul.mubr.f32.gmra.mrb[2].mxu0 %v274_v10  ;;  %643 = vmatmul.mubr.f32.gmra.mrb[2].mxu1 %v276_v11  ;;  %v370_v10 = vld [vmem:[%s1816_s7 + $0x338] sm:$0xff] }
  0x4d   : > { %502 = vmatprep.mubr.f32.mxu0 %v282_v12  ;;  %647 = vmatprep.mubr.f32.mxu1 %v284_v13  ;;  %v278_v11 = vld [vmem:[%s1816_s7 + $0x58] sm:$0xff]  ;;  %v369_v12 = vld [vmem:[%s1816_s7 + $0x330] sm:$0xff] }
  0x4e   : > { %1596 = vmatpush3.bf16.msra.mxu0 %v1743_v3  ;;  %1644 = vmatprep.subr.bf16.mxu1 %v1743_v3  ;;  %v286_v13 = vld [vmem:[%s1816_s7 + $0x98] sm:$0xff] }
  0x4f   : > { %1597 = vmatprep.subr.bf16.mxu0 %v1743_v3  ;;  %1652 = vmatpush3.bf16.msra.mxu1 %v1743_v3 }
  0x50   : > { %503 = vmatmul.mubr.f32.gmra.mrb[4].mxu0 %v281_v14  ;;  %648 = vmatmul.mubr.f32.gmra.mrb[4].mxu1 %v283_v15  ;;  %v377_v14 = vld [vmem:[%s1816_s7 + $0x370] sm:$0xff] }
  0x51   : > { %507 = vmatprep.mubr.f32.mxu0 %v289_v16  ;;  %652 = vmatprep.mubr.f32.mxu1 %v291_v17  ;;  %v285_v15 = vld [vmem:[%s1816_s7 + $0x90] sm:$0xff]  ;;  %v376_v16 = vld [vmem:[%s1816_s7 + $0x368] sm:$0xff] }
  0x52   : > { %1598 = vmatpush3.bf16.msra.mxu0 %v1743_v3  ;;  %1645 = vmatprep.subr.bf16.mxu1 %v1743_v3  ;;  %v293_v17 = vld [vmem:[%s1816_s7 + $0xd0] sm:$0xff] }
  0x53   : > { %1599 = vmatprep.subr.bf16.mxu0 %v1743_v3  ;;  %1653 = vmatpush3.bf16.msra.mxu1 %v1743_v3 }
  0x54   : > { %508 = vmatmul.mubr.f32.gmra.mrb[6].mxu0 %v288_v18  ;;  %653 = vmatmul.mubr.f32.gmra.mrb[6].mxu1 %v290_v19  ;;  %v273_v18 = vld [vmem:[%s1816_s7 + $0x30] sm:$0xff]  ;;  %v280_v19 = vld [vmem:[%s1816_s7 + $0x68] sm:$0xff] }
  0x55   : > { %512 = vmatprep.mubr.f32.mxu0 %v296_v20  ;;  %657 = vmatprep.mubr.f32.mxu1 %v298_v21  ;;  %v300_v20 = vld [vmem:[%s1816_s7 + $0x108] sm:$0xff]  ;;  %v287_v21 = vld [vmem:[%s1816_s7 + $0xa0] sm:$0xff] }
  0x56   : > { %1600 = vmatpush3.bf16.msra.mxu0 %v1743_v3  ;;  %1646 = vmatprep.subr.bf16.mxu1 %v1743_v3 }
  0x57   : > { %1601 = vmatprep.subr.bf16.mxu0 %v1743_v3  ;;  %1654 = vmatpush3.bf16.msra.mxu1 %v1743_v3 }
  0x58   : > { %513 = vmatmul.mubr.f32.gmra.mrb[8].mxu0 %v295_v22  ;;  %658 = vmatmul.mubr.f32.gmra.mrb[8].mxu1 %v297_v23  ;;  %v299_v22 = vld [vmem:[%s1816_s7 + $0x100] sm:$0xff]  ;;  %v294_v23 = vld [vmem:[%s1816_s7 + $0xd8] sm:$0xff] }
  0x59   : > { %517 = vmatprep.mubr.f32.mxu0 %v303_v24  ;;  %662 = vmatprep.mubr.f32.mxu1 %v305_v25  ;;  %v307_v24 = vld [vmem:[%s1816_s7 + $0x140] sm:$0xff]  ;;  %v301_v25 = vld [vmem:[%s1816_s7 + $0x110] sm:$0xff] }
  0x5a   : > { %1602 = vmatpush3.bf16.msra.mxu0 %v1743_v3  ;;  %1647 = vmatprep.subr.bf16.mxu1 %v1743_v3 }
  0x5b   : > { %1603 = vmatprep.subr.bf16.mxu0 %v1743_v3  ;;  %1655 = vmatpush3.bf16.msra.mxu1 %v1743_v3 }
  0x5c   : > { %518 = vmatmul.mubr.f32.gmra.mrb[10].mxu0 %v302_v26  ;;  %663 = vmatmul.mubr.f32.gmra.mrb[10].mxu1 %v304_v27  ;;  %v306_v26 = vld [vmem:[%s1816_s7 + $0x138] sm:$0xff]  ;;  %v308_v27 = vld [vmem:[%s1816_s7 + $0x148] sm:$0xff] }
  0x5d   : > { %522 = vmatprep.mubr.f32.mxu0 %v310_v28  ;;  %667 = vmatprep.mubr.f32.mxu1 %v312_v29  ;;  %v314_v28 = vld [vmem:[%s1816_s7 + $0x178] sm:$0xff]  ;;  %v315_v29 = vld [vmem:[%s1816_s7 + $0x180] sm:$0xff] }
  0x5e   : > { %1604 = vmatpush3.bf16.msra.mxu0 %v1743_v3  ;;  %1648 = vmatprep.subr.bf16.mxu1 %v1743_v3 }
  0x5f   : > { %1605 = vmatprep.subr.bf16.mxu0 %v1743_v3  ;;  %1656 = vmatpush3.bf16.msra.mxu1 %v1743_v3 }
  0x60   : > { %523 = vmatmul.mubr.f32.gmra.mrb[12].mxu0 %v309_v30  ;;  %668 = vmatmul.mubr.f32.gmra.mrb[12].mxu1 %v311_v31  ;;  %v313_v30 = vld [vmem:[%s1816_s7 + $0x170] sm:$0xff]  ;;  %v322_v31 = vld [vmem:[%s1816_s7 + $0x1b8] sm:$0xff] }
  0x61   : > { %527 = vmatprep.mubr.f32.mxu0 %v317_v32  ;;  %672 = vmatprep.mubr.f32.mxu1 %v319_v33  ;;  %v321_v32 = vld [vmem:[%s1816_s7 + $0x1b0] sm:$0xff] }
  0x62   : > { %1606 = vmatpush3.bf16.msra.mxu0 %v1743_v3  ;;  %1649 = vmatprep.subr.bf16.mxu1 %v1743_v3  ;;  %v329_v33 = vld [vmem:[%s1816_s7 + $0x1f0] sm:$0xff] }
  0x63   : > { %1607 = vmatprep.subr.bf16.mxu0 %v1743_v3  ;;  %1657 = vmatpush3.bf16.msra.mxu1 %v1743_v3 }
  0x64   : > { %528 = vmatmul.mubr.f32.gmra.mrb[14].mxu0 %v316_v34  ;;  %673 = vmatmul.mubr.f32.gmra.mrb[14].mxu1 %v318_v35  ;;  %v320_v34 = vld [vmem:[%s1816_s7 + $0x1a8] sm:$0xff] }
  0x65   : > { %532 = vmatprep.mubr.f32.mxu0 %v324_v36  ;;  %677 = vmatprep.mubr.f32.mxu1 %v326_v37  ;;  %v336_v35 = vld [vmem:[%s1816_s7 + $0x228] sm:$0xff]  ;;  %v343_v37 = vld [vmem:[%s1816_s7 + $0x260] sm:$0xff] }
  0x66   : > { %1608 = vmatpush3.bf16.msra.mxu0 %v1743_v3  ;;  %1650 = vmatprep.subr.bf16.mxu1 %v1743_v3  ;;  %v328_v36 = vld [vmem:[%s1816_s7 + $0x1e8] sm:$0xff] }
  0x67   : > { %1658 = vmatpush3.bf16.msra.mxu1 %v1743_v3 }
  0x68   : > { %533 = vmatmul.mubr.f32.gmra.mrb[16].mxu0 %v323_v38  ;;  %678 = vmatmul.mubr.f32.gmra.mrb[16].mxu1 %v325_v39  ;;  %v327_v38 = vld [vmem:[%s1816_s7 + $0x1e0] sm:$0xff]  ;;  %v350_v39 = vld [vmem:[%s1816_s7 + $0x298] sm:$0xff] }
  0x69   : > { %537 = vmatprep.mubr.f32.mxu0 %v331_v40  ;;  %682 = vmatprep.mubr.f32.mxu1 %v333_v41  ;;  %v335_v40 = vld [vmem:[%s1816_s7 + $0x220] sm:$0xff]  ;;  %v357_v41 = vld [vmem:[%s1816_s7 + $0x2d0] sm:$0xff] }
  0x6a   : > { %1609 = vmatprep.subr.bf16.mxu1 %v1743_v3 }
  0x6c   : > { %538 = vmatmul.mubr.f32.gmra.mrb[18].mxu0 %v330_v42  ;;  %683 = vmatmul.mubr.f32.gmra.mrb[18].mxu1 %v332_v43  ;;  %v334_v42 = vld [vmem:[%s1816_s7 + $0x218] sm:$0xff]  ;;  %v364_v43 = vld [vmem:[%s1816_s7 + $0x308] sm:$0xff] }
  0x6d   : > { %542 = vmatprep.mubr.f32.mxu0 %v338_v44  ;;  %687 = vmatprep.mubr.f32.mxu1 %v340_v45  ;;  %v342_v44 = vld [vmem:[%s1816_s7 + $0x258] sm:$0xff]  ;;  %v371_v45 = vld [vmem:[%s1816_s7 + $0x340] sm:$0xff] }
  0x70   : > { %543 = vmatmul.mubr.f32.gmra.mrb[20].mxu0 %v337_v46  ;;  %688 = vmatmul.mubr.f32.gmra.mrb[20].mxu1 %v339_v47  ;;  %v341_v46 = vld [vmem:[%s1816_s7 + $0x250] sm:$0xff]  ;;  %v378_v47 = vld [vmem:[%s1816_s7 + $0x378] sm:$0xff] }
  0x71   : > { %547 = vmatprep.mubr.f32.mxu0 %v345_v48  ;;  %692 = vmatprep.mubr.f32.mxu1 %v347_v49  ;;  %v349_v48 = vld [vmem:[%s1816_s7 + $0x290] sm:$0xff]  ;;  %v348_v49 = vld [vmem:[%s1816_s7 + $0x288] sm:$0xff] }
  0x74   : > { %548 = vmatmul.mubr.f32.gmra.mrb[22].mxu0 %v344_v50  ;;  %693 = vmatmul.mubr.f32.gmra.mrb[22].mxu1 %v346_v51  ;;  %v356_v50 = vld [vmem:[%s1816_s7 + $0x2c8] sm:$0xff]  ;;  %v355_v51 = vld [vmem:[%s1816_s7 + $0x2c0] sm:$0xff] }
  0x75   : > { %552 = vmatprep.mubr.f32.mxu0 %v352_v52  ;;  %697 = vmatprep.mubr.f32.mxu1 %v354_v53  ;;  %v1010_v52 = vld [vmem:[%s213_s8] sm:$0xff] }
  0x78   : > { %553 = vmatmul.mubr.f32.gmra.mrb[24].mxu0 %v351_v54  ;;  %698 = vmatmul.mubr.f32.gmra.mrb[24].mxu1 %v353_v55 }
  0x79   : > { %557 = vmatprep.mubr.f32.mxu0 %v359_v56  ;;  %702 = vmatprep.mubr.f32.mxu1 %v361_v57 }
  0x7c   : > { %558 = vmatmul.mubr.f32.gmra.mrb[26].mxu0 %v358_v58  ;;  %703 = vmatmul.mubr.f32.gmra.mrb[26].mxu1 %v360_v59 }
  0x7d   : > { %562 = vmatprep.mubr.f32.mxu0 %v366_v60  ;;  %707 = vmatprep.mubr.f32.mxu1 %v368_v61 }
  0x80   : > { %563 = vmatmul.mubr.f32.gmra.mrb[28].mxu0 %v365_v62  ;;  %708 = vmatmul.mubr.f32.gmra.mrb[28].mxu1 %v367_v63 }
  0x81   : > { %567 = vmatprep.mubr.f32.mxu0 %v373_v0  ;;  %712 = vmatprep.mubr.f32.mxu1 %v375_v1 }
  0x84   : > { %568 = vmatmul.mubr.f32.gmra.mrb[30].mxu0 %v372_v2  ;;  %713 = vmatmul.mubr.f32.gmra.mrb[30].mxu1 %v374_v4 }
  0x85   : > { %782 = vmatprep.mubr.f32.mxu0 %v272_v5  ;;  %847 = vmatprep.mubr.f32.mxu1 %v363_v6 }
  0x88   : > { %783 = vmatmul.mubr.f32.vlgmr.msra.gmra.mrb[32].mxu0 %v271_v7  ;;  %848 = vmatmul.mubr.f32.vlgmr.msra.gmra.mrb[32].mxu1 %v362_v8 }
  0x89   : > { %787 = vmatprep.mubr.f32.mxu0 %v279_v9  ;;  %852 = vmatprep.mubr.f32.mxu1 %v370_v10 }
  0x8a   : > { %1610 = vmatpush3.bf16.msra.mxu1 %v1743_v3  ;;  %v292_v3 = vld [vmem:[%s1816_s7 + $0xc8] sm:$0xff] }
  0x8c   : > { %788 = vmatmul.mubr.f32.gmra.mrb[34].mxu0 %v278_v11  ;;  %853 = vmatmul.mubr.f32.gmra.mrb[34].mxu1 %v369_v12 }
  0x8d   : > { %792 = vmatprep.mubr.f32.mxu0 %v286_v13  ;;  %857 = vmatprep.mubr.f32.mxu1 %v377_v14 }
  0x90   : > { %793 = vmatmul.mubr.f32.gmra.mrb[36].mxu0 %v285_v15  ;;  %858 = vmatmul.mubr.f32.gmra.mrb[36].mxu1 %v376_v16 }
  0x91   : > { %797 = vmatprep.mubr.f32.mxu0 %v293_v17  ;;  %1502 = vmatprep.mubr.msk.f32.mxu1 %vm379_vm1, %v273_v18 }
  0x94   : > { %798 = vmatmul.mubr.f32.gmra.mrb[38].mxu0 %v292_v3  ;;  %1503 = vmatmul.mubr.msk.f32.vlgmr.msra.gmra.mrb[38].mxu1 %vm379_vm1, %v280_v19 }
  0x95   : > { %802 = vmatprep.mubr.f32.mxu0 %v300_v20  ;;  %1505 = vmatprep.mubr.msk.f32.mxu1 %vm379_vm1, %v287_v21 }
  0x98   : > { %803 = vmatmul.mubr.f32.gmra.mrb[40].mxu0 %v299_v22  ;;  %1506 = vmatmul.mubr.msk.f32.gmra.mrb[40].mxu1 %vm379_vm1, %v294_v23 }
  0x99   : > { %807 = vmatprep.mubr.f32.mxu0 %v307_v24  ;;  %1508 = vmatprep.mubr.msk.f32.mxu1 %vm379_vm1, %v301_v25 }
  0x9c   : > { %808 = vmatmul.mubr.f32.gmra.mrb[42].mxu0 %v306_v26  ;;  %1509 = vmatmul.mubr.msk.f32.gmra.mrb[42].mxu1 %vm379_vm1, %v308_v27 }
  0x9d   : > { %812 = vmatprep.mubr.f32.mxu0 %v314_v28  ;;  %1511 = vmatprep.mubr.msk.f32.mxu1 %vm379_vm1, %v315_v29 }
  0xa0   : > { %813 = vmatmul.mubr.f32.gmra.mrb[44].mxu0 %v313_v30  ;;  %1512 = vmatmul.mubr.msk.f32.gmra.mrb[44].mxu1 %vm379_vm1, %v322_v31 }
  0xa1   : > { %817 = vmatprep.mubr.f32.mxu0 %v321_v32  ;;  %1514 = vmatprep.mubr.msk.f32.mxu1 %vm379_vm1, %v329_v33 }
  0xa4   : > { %818 = vmatmul.mubr.f32.gmra.mrb[46].mxu0 %v320_v34  ;;  %1515 = vmatmul.mubr.msk.f32.gmra.mrb[46].mxu1 %vm379_vm1, %v336_v35 }
  0xa5   : > { %822 = vmatprep.mubr.f32.mxu0 %v328_v36  ;;  %1517 = vmatprep.mubr.msk.f32.mxu1 %vm379_vm1, %v343_v37 }
  0xa8   : > { %823 = vmatmul.mubr.f32.gmra.mrb[48].mxu0 %v327_v38  ;;  %1518 = vmatmul.mubr.msk.f32.gmra.mrb[48].mxu1 %vm379_vm1, %v350_v39 }
  0xa9   : > { %827 = vmatprep.mubr.f32.mxu0 %v335_v40  ;;  %1520 = vmatprep.mubr.msk.f32.mxu1 %vm379_vm1, %v357_v41 }
  0xac   : > { %828 = vmatmul.mubr.f32.gmra.mrb[50].mxu0 %v334_v42  ;;  %1521 = vmatmul.mubr.msk.f32.gmra.mrb[50].mxu1 %vm379_vm1, %v364_v43 }
  0xad   : > { %832 = vmatprep.mubr.f32.mxu0 %v342_v44  ;;  %1523 = vmatprep.mubr.msk.f32.mxu1 %vm379_vm1, %v371_v45 }
  0xb0   : > { %833 = vmatmul.mubr.f32.gmra.mrb[52].mxu0 %v341_v46  ;;  %1524 = vmatmul.mubr.msk.f32.gmra.mrb[52].mxu1 %vm379_vm1, %v378_v47 }
  0xb1   : > { %837 = vmatprep.mubr.f32.mxu0 %v349_v48  ;;  %1558 = vmatprep.mubr.f32.mxu1 %v1010_v52 }
  0xb4   : > { %838 = vmatmul.mubr.f32.gmra.mrb[54].mxu0 %v348_v49 }
  0xb5   : > { %842 = vmatprep.mubr.f32.mxu0 %v356_v50 }
  0xb8   : > { %843 = vmatmul.mubr.f32.gmra.mrb[56].mxu0 %v355_v51 }
 0x11b   : > { %v1254_v53 = vpop.f32.mrb[0].mxu0  ;;  %v1334_v54 = vpop.f32.mrb[0].mxu1 }
 0x11c   : > { %v1255_v55 = vpop.f32.mrb[1].mxu0  ;;  %v1335_v56 = vpop.f32.mrb[1].mxu1 }
 0x11d   : > { %v1256_v57 = vadd.f32 %v1255_v55, %v1254_v53  ;;  %v1336_v58 = vadd.f32 %v1335_v56, %v1334_v54 }
 0x11f   : > { %v2016_v59 = vadd.f32 %v1336_v58, %v1256_v57  ;;  %v1257_v60 = vpop.f32.mrb[2].mxu0  ;;  %v1337_v61 = vpop.f32.mrb[2].mxu1 }
 0x120   : > { %v1258_v62 = vpop.f32.mrb[3].mxu0  ;;  %v1338_v63 = vpop.f32.mrb[3].mxu1 }
 0x121   : > { %v1259_v0 = vadd.f32 %v1258_v62, %v1257_v60  ;;  %v1339_v1 = vadd.f32 %v1338_v63, %v1337_v61 }
 0x123   : > { %v2018_v2 = vadd.f32 %v1339_v1, %v1259_v0  ;;  %v1260_v4 = vpop.f32.mrb[4].mxu0  ;;  %v1340_v5 = vpop.f32.mrb[4].mxu1 }
 0x124   : > { %v1261_v6 = vpop.f32.mrb[5].mxu0  ;;  %v1341_v7 = vpop.f32.mrb[5].mxu1 }
 0x125   : > { %v1262_v8 = vadd.f32 %v1261_v6, %v1260_v4  ;;  %v1342_v9 = vadd.f32 %v1341_v7, %v1340_v5 }
 0x127   : > { %v2020_v10 = vadd.f32 %v1342_v9, %v1262_v8  ;;  %v1263_v11 = vpop.f32.mrb[6].mxu0  ;;  %v1343_v12 = vpop.f32.mrb[6].mxu1 }
 0x128   : > { %v1264_v13 = vpop.f32.mrb[7].mxu0  ;;  %v1344_v14 = vpop.f32.mrb[7].mxu1 }
 0x129   : > { %v1265_v15 = vadd.f32 %v1264_v13, %v1263_v11  ;;  %v1345_v16 = vadd.f32 %v1344_v14, %v1343_v12 }
 0x12b   : > { %v2022_v17 = vadd.f32 %v1345_v16, %v1265_v15  ;;  %v1266_v18 = vpop.f32.mrb[8].mxu0  ;;  %v1346_v3 = vpop.f32.mrb[8].mxu1 }
 0x12c   : > { %v1267_v19 = vpop.f32.mrb[9].mxu0  ;;  %v1347_v20 = vpop.f32.mrb[9].mxu1 }
 0x12d   : > { %v1268_v21 = vadd.f32 %v1267_v19, %v1266_v18  ;;  %v1348_v22 = vadd.f32 %v1347_v20, %v1346_v3 }
 0x12f   : > { %v2024_v23 = vadd.f32 %v1348_v22, %v1268_v21  ;;  %v1269_v24 = vpop.f32.mrb[10].mxu0  ;;  %v1349_v25 = vpop.f32.mrb[10].mxu1 }
 0x130   : > { %v1270_v26 = vpop.f32.mrb[11].mxu0  ;;  %v1350_v27 = vpop.f32.mrb[11].mxu1 }
 0x131   : > { %v1271_v28 = vadd.f32 %v1270_v26, %v1269_v24  ;;  %v1351_v29 = vadd.f32 %v1350_v27, %v1349_v25 }
 0x133   : > { %v2026_v30 = vadd.f32 %v1351_v29, %v1271_v28  ;;  %v1272_v31 = vpop.f32.mrb[12].mxu0  ;;  %v1352_v32 = vpop.f32.mrb[12].mxu1 }
 0x134   : > { %v1273_v33 = vpop.f32.mrb[13].mxu0  ;;  %v1353_v34 = vpop.f32.mrb[13].mxu1 }
 0x135   : > { %v1274_v35 = vadd.f32 %v1273_v33, %v1272_v31  ;;  %v1354_v36 = vadd.f32 %v1353_v34, %v1352_v32 }
 0x137   : > { %v2028_v37 = vadd.f32 %v1354_v36, %v1274_v35  ;;  %v1275_v38 = vpop.f32.mrb[14].mxu0  ;;  %v1355_v39 = vpop.f32.mrb[14].mxu1 }
 0x138   : > { %v1276_v40 = vpop.f32.mrb[15].mxu0  ;;  %v1356_v41 = vpop.f32.mrb[15].mxu1 }
 0x139   : > { %v1277_v42 = vadd.f32 %v1276_v40, %v1275_v38  ;;  %v1357_v43 = vadd.f32 %v1356_v41, %v1355_v39 }
 0x13b   : > { %v2030_v44 = vadd.f32 %v1357_v43, %v1277_v42  ;;  %v1278_v45 = vpop.f32.mrb[16].mxu0  ;;  %v1358_v46 = vpop.f32.mrb[16].mxu1 }
 0x13c   : > { %v1279_v47 = vpop.f32.mrb[17].mxu0  ;;  %v1359_v48 = vpop.f32.mrb[17].mxu1 }
 0x13d   : > { %v1280_v49 = vadd.f32 %v1279_v47, %v1278_v45  ;;  %v1360_v50 = vadd.f32 %v1359_v48, %v1358_v46 }
 0x13f   : > { %v2032_v51 = vadd.f32 %v1360_v50, %v1280_v49  ;;  %v1281_v52 = vpop.f32.mrb[18].mxu0  ;;  %v1361_v53 = vpop.f32.mrb[18].mxu1 }
 0x140   : > { %v1282_v54 = vpop.f32.mrb[19].mxu0  ;;  %v1362_v55 = vpop.f32.mrb[19].mxu1 }
 0x141   : > { %v1283_v56 = vadd.f32 %v1282_v54, %v1281_v52  ;;  %v1363_v57 = vadd.f32 %v1362_v55, %v1361_v53 }
 0x143   : > { %v2034_v58 = vadd.f32 %v1363_v57, %v1283_v56  ;;  %v1284_v60 = vpop.f32.mrb[20].mxu0  ;;  %v1364_v61 = vpop.f32.mrb[20].mxu1 }
 0x144   : > { %v1285_v62 = vpop.f32.mrb[21].mxu0  ;;  %v1365_v63 = vpop.f32.mrb[21].mxu1 }
 0x145   : > { %v1286_v0 = vadd.f32 %v1285_v62, %v1284_v60  ;;  %v1366_v1 = vadd.f32 %v1365_v63, %v1364_v61 }
 0x147   : > { %v2036_v4 = vadd.f32 %v1366_v1, %v1286_v0  ;;  %v1287_v5 = vpop.f32.mrb[22].mxu0  ;;  %v1367_v6 = vpop.f32.mrb[22].mxu1 }
 0x148   : > { %v1288_v7 = vpop.f32.mrb[23].mxu0  ;;  %v1368_v8 = vpop.f32.mrb[23].mxu1 }
 0x149   : > { %v1289_v9 = vadd.f32 %v1288_v7, %v1287_v5  ;;  %v1369_v11 = vadd.f32 %v1368_v8, %v1367_v6 }
 0x14b   : > { %v2038_v12 = vadd.f32 %v1369_v11, %v1289_v9  ;;  %v1290_v13 = vpop.f32.mrb[24].mxu0  ;;  %v1370_v14 = vpop.f32.mrb[24].mxu1 }
 0x14c   : > { %v1291_v15 = vpop.f32.mrb[25].mxu0  ;;  %v1371_v16 = vpop.f32.mrb[25].mxu1 }
 0x14d   : > { %v1292_v18 = vadd.f32 %v1291_v15, %v1290_v13  ;;  %v1372_v3 = vadd.f32 %v1371_v16, %v1370_v14 }
 0x14f   : > { %v2040_v19 = vadd.f32 %v1372_v3, %v1292_v18  ;;  %v1293_v20 = vpop.f32.mrb[26].mxu0  ;;  %v1373_v21 = vpop.f32.mrb[26].mxu1 }
 0x150   : > { %v1294_v22 = vpop.f32.mrb[27].mxu0  ;;  %v1374_v24 = vpop.f32.mrb[27].mxu1 }
 0x151   : > { %v1295_v25 = vadd.f32 %v1294_v22, %v1293_v20  ;;  %v1375_v26 = vadd.f32 %v1374_v24, %v1373_v21 }
 0x153   : > { %v705_v27 = vadd.f32 %v1375_v26, %v1295_v25  ;;  %v1296_v28 = vpop.f32.mrb[28].mxu0  ;;  %v1376_v29 = vpop.f32.mrb[28].mxu1 }
 0x154   : > { %v1297_v31 = vpop.f32.mrb[29].mxu0  ;;  %v1377_v32 = vpop.f32.mrb[29].mxu1 }
 0x155   : > { %v1298_v33 = vadd.f32 %v1297_v31, %v1296_v28  ;;  %v1378_v34 = vadd.f32 %v1377_v32, %v1376_v29 }
 0x157   : > { %v710_v35 = vadd.f32 %v1378_v34, %v1298_v33  ;;  %v1299_v36 = vpop.f32.mrb[30].mxu0  ;;  %v1379_v38 = vpop.f32.mrb[30].mxu1 }
 0x158   : > { %v1300_v39 = vpop.f32.mrb[31].mxu0  ;;  %v1380_v40 = vpop.f32.mrb[31].mxu1 }
 0x159   : > { %v1301_v41 = vadd.f32 %v1300_v39, %v1299_v36  ;;  %v1381_v42 = vadd.f32 %v1380_v40, %v1379_v38 }
 0x15b   : > { %v715_v43 = vadd.f32 %v1381_v42, %v1301_v41  ;;  %v1414_v45 = vpop.f32.mrb[32].mxu0  ;;  %v1453_v46 = vpop.f32.mrb[32].mxu1 }
 0x15c   : > { %v1415_v47 = vpop.f32.mrb[33].mxu0  ;;  %v1454_v48 = vpop.f32.mrb[33].mxu1 }
 0x15d   : > { %v1416_v49 = vadd.f32 %v1415_v47, %v1414_v45  ;;  %v1455_v50 = vadd.f32 %v1454_v48, %v1453_v46 }
 0x15f   : > { %v1417_v52 = vpop.f32.mrb[34].mxu0  ;;  %v1456_v53 = vpop.f32.mrb[34].mxu1  ;;  %v785_v54 = vadd.f32 %v1416_v49, %v2016_v59  ;;  %v2043_v55 = vadd.f32 %v1455_v50, %v705_v27 }
 0x160   : > { %v1418_v56 = vpop.f32.mrb[35].mxu0  ;;  %v1457_v57 = vpop.f32.mrb[35].mxu1 }
 0x161   : > { %v1419_v60 = vadd.f32 %v1418_v56, %v1417_v52  ;;  %v1458_v61 = vadd.f32 %v1457_v57, %v1456_v53 }
 0x163   : > { %v1420_v62 = vpop.f32.mrb[36].mxu0  ;;  %v1459_v63 = vpop.f32.mrb[36].mxu1  ;;  %v790_v0 = vadd.f32 %v1419_v60, %v2018_v2  ;;  %v2046_v1 = vadd.f32 %v1458_v61, %v710_v35 }
 0x164   : > { %v1421_v5 = vpop.f32.mrb[37].mxu0  ;;  %v1460_v6 = vpop.f32.mrb[37].mxu1 }
 0x165   : > { %v1422_v7 = vadd.f32 %v1421_v5, %v1420_v62  ;;  %v1461_v8 = vadd.f32 %v1460_v6, %v1459_v63 }
 0x167   : > { %v1423_v9 = vpop.f32.mrb[38].mxu0  ;;  %v1504_v11 = vpop.f32.mrb[38].mxu1  ;;  %v795_v59 = vadd.f32 %v1422_v7, %v2020_v10  ;;  %v2049_v13 = vadd.f32 %v1461_v8, %v715_v43 }
 0x168   : > { %v935_v14 = vadd.f32 %v1504_v11, %v790_v0  ;;  %v1424_v15 = vpop.f32.mrb[39].mxu0  ;;  %v929_v16 = vpop.f32.mrb[39].mxu1 }
 0x169   : > { %v1425_v18 = vadd.f32 %v1424_v15, %v1423_v9  ;;  %v930_v3 = vadd.f32 %v929_v16, %v785_v54 }
 0x16b   : > { %v1611_v20 = vpack.c.bf16 %v935_v14, %v930_v3  ;;  %v1426_v21 = vpop.f32.mrb[40].mxu0  ;;  %v800_v2 = vadd.f32 %v1425_v18, %v2022_v17  ;;  %v1507_v22 = vpop.f32.mrb[40].mxu1 }
 0x16c   : > { %v1427_v24 = vpop.f32.mrb[41].mxu0  ;;  %v939_v25 = vpop.f32.mrb[41].mxu1 }
 0x16d   : > { %v945_v26 = vadd.f32 %v1507_v22, %v800_v2  ;;  %v1428_v27 = vadd.f32 %v1427_v24, %v1426_v21  ;;  %v940_v28 = vadd.f32 %v939_v25, %v795_v59  ;;  %1612 = vmatprep.subr.bf16.mxu1 %v1611_v20 }
 0x16e   : > { %1614 = vmatpush3.bf16.msra.mxu1 %v1611_v20 }
 0x16f   : > { %v1615_v10 = vpack.c.bf16 %v945_v26, %v940_v28  ;;  %v1429_v29 = vpop.f32.mrb[42].mxu0  ;;  %v1510_v31 = vpop.f32.mrb[42].mxu1  ;;  %v805_v32 = vadd.f32 %v1428_v27, %v2024_v23 }
 0x170   : > { %v1430_v33 = vpop.f32.mrb[43].mxu0  ;;  %v949_v34 = vpop.f32.mrb[43].mxu1 }
 0x171   : > { %v1431_v35 = vadd.f32 %v1430_v33, %v1429_v29  ;;  %v950_v36 = vadd.f32 %v949_v34, %v805_v32  ;;  %1616 = vmatprep.subr.bf16.mxu1 %v1615_v10  ;;  %v1009_v32 = vld [vmem:[#allocation2 + $0x8] sm:$0xff] }
 0x172   : > { %1618 = vmatpush3.bf16.msra.mxu1 %v1615_v10 }
 0x173   : > { %v810_v17 = vadd.f32 %v1431_v35, %v2026_v30  ;;  %v1432_v38 = vpop.f32.mrb[44].mxu0  ;;  %v1513_v39 = vpop.f32.mrb[44].mxu1 }
 0x174   : > { %v1433_v40 = vpop.f32.mrb[45].mxu0  ;;  %v959_v41 = vpop.f32.mrb[45].mxu1 }
 0x175   : > { %v955_v42 = vadd.f32 %v1510_v31, %v810_v17  ;;  %v1434_v43 = vadd.f32 %v1433_v40, %v1432_v38  ;;  %v1011_v31 = vld [vmem:[%s213_s8 + $0x8] sm:$0xff]  ;;  %v1098_v17 = vld [vmem:[%s2096_s2] sm:$0xff] (!%p1218_p11) }
 0x176   : > { %v1099_v40 = vld [vmem:[%s2096_s2 + $0x8] sm:$0xff] (!%p1218_p11) }
 0x177   : > { %v1619_v45 = vpack.c.bf16 %v955_v42, %v950_v36  ;;  %v1435_v46 = vpop.f32.mrb[46].mxu0  ;;  %v815_v47 = vadd.f32 %v1434_v43, %v2028_v37  ;;  %v1516_v48 = vpop.f32.mrb[46].mxu1 }
 0x178   : > { %v1436_v23 = vpop.f32.mrb[47].mxu0  ;;  %v969_v49 = vpop.f32.mrb[47].mxu1 }
 0x179   : > { %v1437_v50 = vadd.f32 %v1436_v23, %v1435_v46  ;;  %v960_v52 = vadd.f32 %v959_v41, %v815_v47  ;;  %1620 = vmatprep.subr.bf16.mxu1 %v1619_v45 }
 0x17a   : > { %1622 = vmatpush3.bf16.msra.mxu1 %v1619_v45 }
 0x17b   : > { %v820_v53 = vadd.f32 %v1437_v50, %v2030_v44  ;;  %v1438_v30 = vpop.f32.mrb[48].mxu0  ;;  %v1519_v54 = vpop.f32.mrb[48].mxu1 }
 0x17c   : > { %v1439_v56 = vpop.f32.mrb[49].mxu0  ;;  %v979_v57 = vpop.f32.mrb[49].mxu1 }
 0x17d   : > { %v965_v60 = vadd.f32 %v1513_v39, %v820_v53  ;;  %v1440_v61 = vadd.f32 %v1439_v56, %v1438_v30 }
 0x17f   : > { %v1623_v62 = vpack.c.bf16 %v965_v60, %v960_v52  ;;  %v825_v63 = vadd.f32 %v1440_v61, %v2032_v51  ;;  %v1441_v0 = vpop.f32.mrb[50].mxu0  ;;  %v1522_v37 = vpop.f32.mrb[50].mxu1 }
 0x180   : > { %v995_v5 = vadd.f32 %v1522_v37, %v2043_v55  ;;  %v1442_v6 = vpop.f32.mrb[51].mxu0  ;;  %v989_v7 = vpop.f32.mrb[51].mxu1 }
 0x181   : > { %v970_v8 = vadd.f32 %v969_v49, %v825_v63  ;;  %v1443_v9 = vadd.f32 %v1442_v6, %v1441_v0  ;;  %1624 = vmatprep.subr.bf16.mxu1 %v1623_v62 }
 0x182   : > { %1626 = vmatpush3.bf16.msra.mxu1 %v1623_v62 }
 0x183   : > { %v830_v44 = vadd.f32 %v1443_v9, %v2034_v58  ;;  %v1444_v11 = vpop.f32.mrb[52].mxu0  ;;  %v1525_v59 = vpop.f32.mrb[52].mxu1 }
 0x184   : > { %v1005_v14 = vadd.f32 %v1525_v59, %v2049_v13  ;;  %v1445_v15 = vpop.f32.mrb[53].mxu0  ;;  %v999_v16 = vpop.f32.mrb[53].mxu1 }
 0x185   : > { %v975_v18 = vadd.f32 %v1516_v48, %v830_v44  ;;  %v1446_v51 = vadd.f32 %v1445_v15, %v1444_v11  ;;  %v1000_v3 = vadd.f32 %v999_v16, %v2046_v1 }
 0x187   : > { %v835_v55 = vadd.f32 %v1446_v51, %v2036_v4  ;;  %v1639_v20 = vpack.c.bf16 %v1005_v14, %v1000_v3  ;;  %v1447_v21 = vpop.f32.mrb[54].mxu0  ;;  %v1627_v2 = vpack.c.bf16 %v975_v18, %v970_v8 }
 0x188   : > { %v1448_v22 = vpop.f32.mrb[55].mxu0 }
 0x189   : > { %v980_v24 = vadd.f32 %v979_v57, %v835_v55  ;;  %v1449_v25 = vadd.f32 %v1448_v22, %v1447_v21  ;;  %1628 = vmatprep.subr.bf16.mxu1 %v1627_v2 }
 0x18a   : > { %1630 = vmatpush3.bf16.msra.mxu1 %v1627_v2 }
 0x18b   : > { %v840_v58 = vadd.f32 %v1449_v25, %v2038_v12  ;;  %v1450_v13 = vpop.f32.mrb[56].mxu0  ;;  %v1008_v12 = vld [vmem:[#allocation2] sm:$0xff] }
 0x18c   : > { %v1451_v26 = vpop.f32.mrb[57].mxu0 }
 0x18d   : > { %v985_v27 = vadd.f32 %v1519_v54, %v840_v58  ;;  %v1452_v28 = vadd.f32 %v1451_v26, %v1450_v13 }
 0x18f   : > { %v845_v10 = vadd.f32 %v1452_v28, %v2040_v19  ;;  %v1631_v1 = vpack.c.bf16 %v985_v27, %v980_v24 }
 0x191   : > { %v990_v29 = vadd.f32 %v989_v7, %v845_v10  ;;  %1632 = vmatprep.subr.bf16.mxu1 %v1631_v1 }
 0x192   : > { %1634 = vmatpush3.bf16.msra.mxu1 %v1631_v1 }
 0x193   : > { %v1635_v4 = vpack.c.bf16 %v995_v5, %v990_v29 }
 0x195   : > { %1636 = vmatprep.subr.bf16.mxu1 %v1635_v4 }
 0x196   : > { %1638 = vmatpush3.bf16.msra.mxu1 %v1635_v4 }
 0x197   : > { %1640 = vmatprep.subr.bf16.mxu1 %v1639_v20 }
 0x19a   : > { %1642 = vmatpush3.bf16.msra.mxu1 %v1639_v20 }
 0x19d   : > { %1559 = vmatmul.mubr.f32.vlgmr.msra.gmra.mrb[54].mxu1 %v1011_v31 }
 0x26e   : > { %1095 = sbr.rel (%p1218_p11) target bundleno = 639 (0x27f), region = 78 }
 0x270   : > { %v1560_v33 = vpop.f32.mrb[54].mxu1 }
 0x271   : > { %v1088_v34 = vadd.f32 %v1560_v33, %v1009_v32  ;;  %v1078_v35 = vpop.f32.mrb[55].mxu1 }
 0x272   : > { %v1087_v36 = vadd.f32 %v1078_v35, %v1008_v12 }
 0x273   : > { %1091 = vst.msk [vmem:[#allocation2 + $0x8] sm:$0xff] %vm1089_vm2, %v1088_v34 }
 0x274   : > { %1090 = vst.msk [vmem:[#allocation2] sm:$0xff] %vm1089_vm2, %v1087_v36 }
 0x27a   : > { %v1097_v38 = vld [vmem:[#allocation2 + $0x8] sm:$0xff] }
 0x27b   : > { %v1096_v19 = vld [vmem:[#allocation2] sm:$0xff]  ;;  %v1101_v41 = vadd.f32 %v1099_v40, %v1097_v38 }
 0x27c   : > { %v1100_v39 = vadd.f32 %v1098_v17, %v1096_v19 }
 0x27d   : > { %1103 = vst.msk [vmem:[%s2097_s3 + $0x8] sm:$0xff] %vm1089_vm2, %v1101_v41 }
 0x27e   : > { %1102 = vst.msk [vmem:[%s2097_s3] sm:$0xff] %vm1089_vm2, %v1100_v39 }
 0x27f PF: > { %s13_s16 = sadd.s32 1, %s1740_s16   ;;  %s2098_s12 = smov %s1728_s13 }
 0x280   : > { %p10_p12 = scmp.ge.s32.totalorder %s13_s16, 5   ;;  %s2099_s13 = smov %s1799_s20 }
 0x281   : > { %s2100_s14 = smov %s1736_s15  ;;  %s2101_s15 = smov %s2103_s17 }
 0x282   :  { %12 = sbr.rel (!%p10_p12) target bundleno = 3 (0x3), region = 116 }

</bundles_post_ra>
